<compile_context>
chip_gen: v7x
topology: tpu7x:2x2x1
jax: 0.10.0
libtpu: 0.0.40
codegen_flags: <defaults>
</compile_context>

<pallas_src>
import functools

import jax
import jax.numpy as jnp
from jax import lax
from jax.experimental import pallas as pl
from jax.experimental.pallas import tpu as pltpu

_LANE = 128


def _round_up(x, m):
    return -(-x // m) * m


def _sublane_multiple(itemsize):
    # 32-bit dtypes: 8 sublanes/vreg; 16-bit packs 2 per sublane; 8-bit packs 4.
    return {1: 32, 2: 16}.get(itemsize, 8)


def _per_buffer_budget():
    """Padded bytes allowed per input buffer (double-buffered by the pipeline)."""
    # v7x streams HBM ~2.3x faster than v6e, so it needs bigger grid steps to
    # amortize the ~0.35 us per-step overhead; 2 x 12 MiB still leaves ample
    # headroom under its 64 MiB per-TC VMEM.
    budget = 8 << 20
    try:
        kind = jax.devices()[0].device_kind.lower()
        if "v7" in kind or "7x" in kind:
            budget = 12 << 20
    except Exception:
        pass
    return budget


def _choose_tiles(rows, hw, itemsize, budget):
    """Pick (tile_r, tile_hw, mask_tail) by *padded* per-buffer VMEM footprint."""
    sub = _sublane_multiple(itemsize)
    hw_pad = _round_up(hw, _LANE)

    # Widest 128-lane-padded strip a minimal row tile can carry within budget.
    max_hw_pad = max(_LANE, (budget // (sub * itemsize)) // _LANE * _LANE)

    if hw_pad <= max_hw_pad:
        # Whole reduction axis in one grid step (block == full dim is legal
        # even when hw is not a multiple of 128).
        tile_hw, tile_hw_pad, mask_tail = hw, hw_pad, False
    else:
        # Split hw into 128-lane multiples; the ragged last chunk is masked
        # with an iota compare inside the kernel so the sum stays exact.
        tile_hw = tile_hw_pad = max_hw_pad
        mask_tail = (hw % tile_hw) != 0

    # Row tile: largest sublane multiple whose padded footprint fits budget.
    max_r = max(sub, (budget // (tile_hw_pad * itemsize)) // sub * sub)
    if rows <= sub:
        tile_r = rows                       # block == full dim (always legal)
    else:
        tile_r = min(max_r, _round_up(rows, sub))
        # Keep >= 2 programs on the parallel rows axis so multi-TC chips (v7x)
        # shard the grid across both TensorCores.
        if rows >= 2 * sub:
            tile_r = min(tile_r, _round_up(pl.cdiv(rows, 2), sub))
    return tile_r, tile_hw, mask_tail


def _gap_kernel(x_ref, o_ref, acc_ref, *, hw, tile_hw, inv_hw, mask_tail):
    # x_ref:   (tile_r, tile_hw) input tile in VMEM
    # o_ref:   (tile_r, 1) output tile (resident across the HW reduction axis)
    # acc_ref: (tile_r, 1) f32 scratch accumulator
    j = pl.program_id(1)

    @pl.when(j == 0)
    def _():
        acc_ref[...] = jnp.zeros_like(acc_ref)

    x = x_ref[...]
    if mask_tail:
        # Zero lanes beyond the valid spatial extent of the (ragged) last
        # reduction block; Pallas pads OOB input regions with unspecified data.
        col = lax.broadcasted_iota(jnp.int32, x.shape, 1)
        valid = hw - j * tile_hw
        x = jnp.where(col < valid, x, jnp.zeros_like(x))

    # Fused widen + reduce: f32 accumulation for any input dtype without
    # materializing a full-tile f32 temporary.
    acc_ref[...] += jnp.sum(x, axis=-1, keepdims=True, dtype=jnp.float32)

    @pl.when(j == pl.num_programs(1) - 1)
    def _():
        o_ref[...] = (acc_ref[...] * jnp.float32(inv_hw)).astype(o_ref.dtype)


def global_avg_pool2d(x, *, vmem_budget_bytes=None):
    """Equivalent of F.avg_pool2d(x, kernel_size=x.shape[2:]) for NCHW input."""
    n, c, h, w = x.shape
    rows, hw = n * c, h * w
    x2d = x.reshape(rows, hw)

    itemsize = jnp.dtype(x.dtype).itemsize
    budget = vmem_budget_bytes if vmem_budget_bytes is not None else _per_buffer_budget()
    tile_r, tile_hw, mask_tail = _choose_tiles(rows, hw, itemsize, budget)
    grid = (pl.cdiv(rows, tile_r), pl.cdiv(hw, tile_hw))

    # Padded VMEM footprint -> explicit scoped-VMEM limit, so tile selection is
    # deterministic regardless of each generation's default scoped limit.
    sub = _sublane_multiple(itemsize)
    r_pad = _round_up(tile_r, sub)
    in_buf = r_pad * _round_up(tile_hw, _LANE) * itemsize     # x2 (double-buffered)
    out_buf = r_pad * _LANE * itemsize                        # x2
    acc_buf = _round_up(tile_r, 8) * _LANE * 4
    vmem_limit = 2 * in_buf + 2 * out_buf + acc_buf + (2 << 20)
    vmem_limit = int(min(max(vmem_limit, 16 << 20), 60 << 20))

    kernel = functools.partial(
        _gap_kernel, hw=hw, tile_hw=tile_hw, inv_hw=1.0 / hw, mask_tail=mask_tail)

    out = pl.pallas_call(
        kernel,
        out_shape=jax.ShapeDtypeStruct((rows, 1), x.dtype),
        grid_spec=pltpu.PrefetchScalarGridSpec(
            num_scalar_prefetch=0,
            grid=grid,
            in_specs=[pl.BlockSpec((tile_r, tile_hw), lambda i, j: (i, j))],
            out_specs=pl.BlockSpec((tile_r, 1), lambda i, j: (i, 0)),
            scratch_shapes=[pltpu.VMEM((tile_r, 1), jnp.float32)],
        ),
        compiler_params=pltpu.CompilerParams(
            # Row tiles are fully independent -> shard across TensorCores on
            # multi-core chips; the HW reduction axis stays last / "arbitrary"
            # because the output and accumulator are resident across it.
            dimension_semantics=("parallel", "arbitrary"),
            vmem_limit_bytes=vmem_limit,
        ),
        cost_estimate=pl.CostEstimate(
            flops=rows * hw,
            transcendentals=0,
            bytes_accessed=rows * hw * itemsize + rows * itemsize,
        ),
    )(x2d)

    return out.reshape(n, c, 1, 1)


if __name__ == "__main__":
    key = jax.random.PRNGKey(0)

    # Primary check: f32, shape consistent with the module spec.
    x = jax.random.normal(key, (2, 4, 16, 16), dtype=jnp.float32)
    y = global_avg_pool2d(x)
    jax.block_until_ready(y)
    y_ref = jnp.mean(x, axis=(2, 3), keepdims=True)
    assert y.shape == (2, 4, 1, 1), y.shape
    assert jnp.allclose(y, y_ref, atol=1e-5, rtol=1e-5)

    # Ragged row-count check (N*C not a multiple of the sublane tile).
    x2 = jax.random.normal(jax.random.PRNGKey(1), (3, 5, 8, 12), dtype=jnp.float32)
    y2 = global_avg_pool2d(x2)
    jax.block_until_ready(y2)
    y2_ref = jnp.mean(x2, axis=(2, 3), keepdims=True)
    assert jnp.allclose(y2, y2_ref, atol=1e-5, rtol=1e-5)

    # bf16 input check (f32 accumulation fused into the reduce).
    x3 = jax.random.normal(jax.random.PRNGKey(2), (2, 4, 16, 16)).astype(jnp.bfloat16)
    y3 = global_avg_pool2d(x3)
    jax.block_until_ready(y3)
    y3_ref = jnp.mean(x3.astype(jnp.float32), axis=(2, 3), keepdims=True)
    assert jnp.allclose(y3.astype(jnp.float32), y3_ref, atol=2e-2, rtol=2e-2)

    # Row-parallel split check (grid axis 0 > 1 program, accumulator per tile).
    x4 = jax.random.normal(jax.random.PRNGKey(3), (4, 8, 8, 8), dtype=jnp.float32)
    y4 = global_avg_pool2d(x4)
    jax.block_until_ready(y4)
    y4_ref = jnp.mean(x4, axis=(2, 3), keepdims=True)
    assert jnp.allclose(y4, y4_ref, atol=1e-5, rtol=1e-5)

    # Masked hw-split path check: tiny forced budget makes hw=300 split into
    # 128-multiple chunks with a masked ragged tail (exercises the large-
    # spatial code path at a small shape).
    x5 = jax.random.normal(jax.random.PRNGKey(4), (2, 3, 15, 20), dtype=jnp.float32)
    y5 = global_avg_pool2d(x5, vmem_budget_bytes=8 * 1024)
    jax.block_until_ready(y5)
    y5_ref = jnp.mean(x5, axis=(2, 3), keepdims=True)
    assert jnp.allclose(y5, y5_ref, atol=1e-5, rtol=1e-5)

    print("KERNEL_OK")
</pallas_src>

<mosaic_0001>
module attributes {stable_mosaic.version = 11 : i64} {
  func.func @_gap_kernel(%arg0: i32, %arg1: i32, %arg2: memref<8x256xf32, #tpu.memory_space<vmem>>, %arg3: memref<8x1xf32, #tpu.memory_space<vmem>>, %arg4: memref<8x1xf32, #tpu.memory_space<vmem>>) attributes {dimension_semantics = [#tpu.dimension_semantics<parallel>, #tpu.dimension_semantics<arbitrary>], iteration_bounds = array<i64: 1, 1>, scalar_prefetch = 0 : i64, scratch_operands = 1 : i64, tpu.core_type = #tpu.core_type<tc>, window_params = [{transform_indices = @transform_0, window_bounds = array<i64: 8, 256>}, {transform_indices = @transform_1, window_bounds = array<i64: 8, 1>}]} {
    %c0_i32 = arith.constant 0 : i32
    %0 = arith.cmpi eq, %arg1, %c0_i32 : i32
    %1 = arith.extui %0 : i1 to i32
    %c0_i32_0 = arith.constant 0 : i32
    %2 = arith.cmpi ne, %1, %c0_i32_0 : i32
    scf.if %2 {
      %cst_8 = arith.constant 0.000000e+00 : f32
      %12 = vector.broadcast %cst_8 : f32 to vector<8x1xf32>
      %c0_9 = arith.constant 0 : index
      %c0_10 = arith.constant 0 : index
      %13 = vector.load %arg4[%c0_9, %c0_10] : memref<8x1xf32, #tpu.memory_space<vmem>>, vector<8x1xf32>
      tpu.vector_store %arg4[%c0_9, %c0_10], %12 {strides = array<i32>} : memref<8x1xf32, #tpu.memory_space<vmem>>, vector<8x1xf32>,
    } else {
    }
    %c0 = arith.constant 0 : index
    %c0_1 = arith.constant 0 : index
    %3 = vector.load %arg2[%c0, %c0_1] : memref<8x256xf32, #tpu.memory_space<vmem>>, vector<8x256xf32>
    %c0_2 = arith.constant 0 : index
    %c0_3 = arith.constant 0 : index
    %4 = vector.load %arg4[%c0_2, %c0_3] : memref<8x1xf32, #tpu.memory_space<vmem>>, vector<8x1xf32>
    %cst = arith.constant dense<0.000000e+00> : vector<8xf32>
    %5 = vector.multi_reduction <add>, %3, %cst [1] : vector<8x256xf32> to vector<8xf32>
    %6 = vector.shape_cast %5 : vector<8xf32> to vector<8x1xf32>
    %7 = arith.addf %4, %6 : vector<8x1xf32>
    %c0_4 = arith.constant 0 : index
    %c0_5 = arith.constant 0 : index
    %8 = vector.load %arg4[%c0_4, %c0_5] : memref<8x1xf32, #tpu.memory_space<vmem>>, vector<8x1xf32>
    tpu.vector_store %arg4[%c0_4, %c0_5], %7 {strides = array<i32>} : memref<8x1xf32, #tpu.memory_space<vmem>>, vector<8x1xf32>,
    %c0_i32_6 = arith.constant 0 : i32
    %9 = arith.cmpi eq, %arg1, %c0_i32_6 : i32
    %10 = arith.extui %9 : i1 to i32
    %c0_i32_7 = arith.constant 0 : i32
    %11 = arith.cmpi ne, %10, %c0_i32_7 : i32
    scf.if %11 {
      %c0_8 = arith.constant 0 : index
      %c0_9 = arith.constant 0 : index
      %12 = vector.load %arg4[%c0_8, %c0_9] : memref<8x1xf32, #tpu.memory_space<vmem>>, vector<8x1xf32>
      %cst_10 = arith.constant 3.906250e-03 : f32
      %13 = vector.broadcast %cst_10 : f32 to vector<8x1xf32>
      %14 = arith.mulf %12, %13 : vector<8x1xf32>
      %c0_11 = arith.constant 0 : index
      %c0_12 = arith.constant 0 : index
      %15 = vector.load %arg3[%c0_11, %c0_12] : memref<8x1xf32, #tpu.memory_space<vmem>>, vector<8x1xf32>
      tpu.vector_store %arg3[%c0_11, %c0_12], %14 {strides = array<i32>} : memref<8x1xf32, #tpu.memory_space<vmem>>, vector<8x1xf32>,
    } else {
    }
    return
  }
  func.func @transform_0(%arg0: i32, %arg1: i32) -> (i32, i32) {
    %c0_i32 = arith.constant 0 : i32
    return %arg0, %arg1 : i32, i32
  }
  func.func @transform_1(%arg0: i32, %arg1: i32) -> (i32, i32) {
    %c0_i32 = arith.constant 0 : i32
    %c0_i32_0 = arith.constant 0 : i32
    return %arg0, %c0_i32 : i32, i32
  }
}

</mosaic_0001>

<bundles_post_ra>
// kernel: tpu_custom_call.1
= control target key start
LH: loop header
LB: loop body
LE: loop exit
PB: predicated region body
PF: predicated region fallthrough
CT: control target
= control target key end

     0   :  { %6 = vsyncpa [#allocation4], 0  ;;  %s72_s6 = smov [#allocation3]   ;;  %s99_s0 = inlined_call_operand.hbm [shape: f32[8,256], index: 0, kind: input, shape index: {}]   ;;  %s100_s1 = inlined_call_operand.vmem [shape: f32[8,1], index: 1, kind: output, shape index: {}]  }
   0x1   :  { %s13_s7 = sshll.u32 %s72_s6, 4  ;;  %s48_s10 = scalar_lea.hbm %s99_s0, 256  ;;  %s14_s7 = int_to_ptr.vmem [resolvable:$true] %s13_s7 }
   0x2   :  { %p49_p0 = scmp.ne.s32.totalorder %s99_s0, %s48_s10  ;;  %p52_p1 = scmp.lt.u32.totalorder %s48_s10, %s99_s0 }
   0x4   :  { %p54_p2 = pnand %p52_p1, %p49_p0 }
   0x6   :  { %57 = shalt.err (!%p54_p2)
}
   0x7   :  { %s58_s15 = scalar_lea.vmem %s14_s7, 256  ;;  %p63_p4 = scmp.lt.s32.totalorder %s14_s7, %s14_s7 }
   0x8   :  { %p59_p3 = scmp.ne.s32.totalorder %s14_s7, %s58_s15  ;;  %p64_p5 = scmp.lt.s32.totalorder %s58_s15, %s58_s15 }
   0xa   :  { %p65_p6 = por %p64_p5, %p63_p4 }
   0xc   :  { %p66_p7 = pnand %p65_p6, %p59_p3 }
   0xe   :  { %69 = shalt.err (!%p66_p7)
}
   0xf   :  { %16 = dma.hbm_to_vmem [thread:$0]  %s99_s0, 256, %s14_s7, [#allocation4]  }
  0x10   :  { %70 = dma.done.wait [#allocation4], 256  }
  0x11   :  { %71 = vsyncadd [#allocation4], 4294967040  ;;  %vm24_vm0 = vcmask 7168   ;;  %v73_v0 = vmov 0.0   ;;  %v26_v1 = vld [vmem:[#allocation3] sm:$0xff]  ;;  %v27_v2 = vld [vmem:[#allocation3 + $0x8] sm:$0xff] }
  0x12   :  { %25 = vst.msk [vmem:[#allocation2] sm:$0xff] %vm24_vm0, %v73_v0  ;;  %v29_v3 = vadd.f32 %v27_v2, %v26_v1 }
  0x14   :  { %30 = vadd.xlane.f32.xlu0 %v29_v3 }
  0x19   :  { %v28_v4 = vld [vmem:[#allocation2] sm:$0xff] }
  0xa1   :  { %v31_v5 = vpop.xlane.xlu0 %30 }
  0xa2   :  { %v32_v6 = vadd.f32 %v31_v5, %v28_v4 }
  0xa4   :  { %34 = vst.msk [vmem:[#allocation2] sm:$0xff] %vm24_vm0, %v32_v6 }
  0xab   :  { %v38_v7 = vld [vmem:[#allocation2] sm:$0xff] }
  0xac   :  { %v39_v8 = vmul.f32 0.00390625, %v38_v7 }
  0xae   :  { %40 = vst.msk [vmem:[%s100_s1] sm:$0xff] %vm24_vm0, %v39_v8 }
  0xaf   :  { %45 = vsyncpa [#allocation4], 1 }

</bundles_post_ra>
